<compile_context>
chip_gen: v5e
topology: v5e:2x2
jax: 0.10.0
libtpu: 0.0.40
codegen_flags: <defaults>
</compile_context>

<pallas_src>
import functools

import jax
import jax.numpy as jnp
from jax.experimental import pallas as pl
from jax.experimental.pallas import tpu as pltpu


# ----------------------------------------------------------------------------
# Kernel: one MXU matmul per batch tile, bf16 inputs, f32 accumulate + bias.
# ----------------------------------------------------------------------------
def _modulation_kernel(x_ref, w_ref, b_ref, o_ref):
    y = jnp.dot(x_ref[...], w_ref[...], preferred_element_type=jnp.float32)
    o_ref[...] = (y + b_ref[...]).astype(o_ref.dtype)


# ----------------------------------------------------------------------------
# One-time parameter fusion (do NOT rebuild this every forward call).
# ----------------------------------------------------------------------------
def init_modulation_params(weights, biases, *, param_dtype=jnp.bfloat16):
    """Fuse n_adain_layers Linear layers into one weight/bias.

    weights: list of (adain_dim*2, code_dim) arrays (PyTorch nn.Linear layout)
    biases:  list of (adain_dim*2,) arrays
    returns: w_all (code_dim, d_out) in `param_dtype`, b_all (1, d_out) f32
    Concatenation order matches torch.cat(..., dim=-1): layer 0, layer 1, ...
    """
    w_all = jnp.concatenate([w.T for w in weights], axis=1).astype(param_dtype)
    b_all = jnp.concatenate(biases, axis=0).reshape(1, -1).astype(jnp.float32)
    return w_all, b_all


def _round_up(n, m):
    return ((n + m - 1) // m) * m


# ----------------------------------------------------------------------------
# Forward: single pallas_call over a batch grid with resident fused weights.
# ----------------------------------------------------------------------------
@functools.partial(jax.jit, static_argnames=("n_adain_layers", "adain_dim",
                                             "tile_b"))
def modulation_forward(x, w_all, b_all, *, n_adain_layers, adain_dim,
                       tile_b=512):
    """Pallas equivalent of Modulation.forward.

    x:      (B, code_dim) float32
    w_all:  (code_dim, n_adain_layers*adain_dim*2) fused weight (bf16)
    b_all:  (1, n_adain_layers*adain_dim*2) fused bias (f32)
    returns (B, n_adain_layers, adain_dim, 2) float32
    """
    B, code_dim = x.shape
    d_out = n_adain_layers * adain_dim * 2
    assert w_all.shape == (code_dim, d_out)
    assert b_all.shape == (1, d_out)

    # Batch tile: multiple of 8 sublanes, no larger than the padded batch.
    tb = max(8, min(_round_up(tile_b, 8), _round_up(B, 8)))
    padded_b = _round_up(B, tb)
    grid = (padded_b // tb,)

    # Pad batch so every tile (and every output store) is full, cast to bf16
    # for native-rate MXU.
    x_p = x
    if padded_b != B:
        x_p = jnp.pad(x, ((0, padded_b - B), (0, 0)))
    x_p = x_p.astype(w_all.dtype)

    # VMEM budget: double-buffered x/out tiles + resident weight/bias, with
    # 2x headroom, capped well under the smallest scoped limits (v5e 16 MiB
    # default raised here only as far as needed; v7x physical 64 MiB).
    vmem_bytes = (2 * tb * code_dim * w_all.dtype.itemsize      # x tiles
                  + 2 * tb * d_out * 4                          # out tiles
                  + 2 * code_dim * d_out * w_all.dtype.itemsize # weight
                  + 2 * d_out * 4)                              # bias
    vmem_limit = int(min(32 * 2**20, max(4 * vmem_bytes, 1 * 2**20)))

    cost = pl.CostEstimate(
        flops=2 * padded_b * code_dim * d_out,
        transcendentals=0,
        bytes_accessed=(padded_b * code_dim * w_all.dtype.itemsize
                        + code_dim * d_out * w_all.dtype.itemsize
                        + d_out * 4
                        + padded_b * d_out * 4),
    )

    out_flat = pl.pallas_call(
        _modulation_kernel,
        out_shape=jax.ShapeDtypeStruct((padded_b, d_out), jnp.float32),
        grid=grid,
        in_specs=[
            pl.BlockSpec((tb, code_dim), lambda i: (i, 0)),       # x: batch-tiled
            pl.BlockSpec((code_dim, d_out), lambda i: (0, 0)),    # w: resident
            pl.BlockSpec((1, d_out), lambda i: (0, 0)),           # b: resident
        ],
        out_specs=pl.BlockSpec((tb, d_out), lambda i: (i, 0)),
        compiler_params=pltpu.CompilerParams(
            dimension_semantics=("parallel",),
            vmem_limit_bytes=vmem_limit,
        ),
        cost_estimate=cost,
    )(x_p, w_all, b_all)

    # Same semantics as PyTorch: reshape(-1, n_adain_layers, adain_dim, 2).
    return out_flat[:B].reshape(B, n_adain_layers, adain_dim, 2)


# ----------------------------------------------------------------------------
# Self-contained test
# ----------------------------------------------------------------------------
if __name__ == "__main__":
    B = 2
    code_dim = 32
    n_adain_layers = 4
    adain_dim = 16                      # d_out = 4 * 16 * 2 = 128 (lane-dense)

    key = jax.random.PRNGKey(0)
    keys = jax.random.split(key, 1 + 2 * n_adain_layers)
    kx, kparams = keys[0], keys[1:]

    x = jax.random.normal(kx, (B, code_dim), jnp.float32)
    weights, biases = [], []
    for i in range(n_adain_layers):
        w = jax.random.normal(kparams[2 * i], (adain_dim * 2, code_dim),
                              jnp.float32) * 0.1
        b = jax.random.normal(kparams[2 * i + 1], (adain_dim * 2,),
                              jnp.float32) * 0.01
        weights.append(w)
        biases.append(b)

    # One-time parameter fusion (hoisted out of the per-call path).
    w_all, b_all = init_modulation_params(weights, biases)

    out = modulation_forward(x, w_all, b_all,
                             n_adain_layers=n_adain_layers,
                             adain_dim=adain_dim)
    out = jax.block_until_ready(out)

    assert out.shape == (B, n_adain_layers, adain_dim, 2), out.shape
    assert bool(jnp.all(jnp.isfinite(out)))

    # Pure-JAX f32 reference (mirrors the PyTorch module exactly).
    ref = jnp.concatenate([x @ w.T + b for w, b in zip(weights, biases)],
                          axis=-1).reshape(B, n_adain_layers, adain_dim, 2)
    # bf16 MXU inputs with f32 accumulation -> relaxed tolerance vs f32 ref.
    assert bool(jnp.allclose(out, ref, atol=3e-2, rtol=3e-2)), (
        float(jnp.max(jnp.abs(out - ref))))

    print("KERNEL_OK")
</pallas_src>

<mosaic_0001>
module attributes {stable_mosaic.version = 11 : i64} {
  func.func @_modulation_kernel(%arg0: i32, %arg1: memref<8x32xbf16, #tpu.memory_space<vmem>>, %arg2: memref<32x128xbf16, #tpu.memory_space<vmem>>, %arg3: memref<1x128xf32, #tpu.memory_space<vmem>>, %arg4: memref<8x128xf32, #tpu.memory_space<vmem>>) attributes {dimension_semantics = [#tpu.dimension_semantics<parallel>], iteration_bounds = array<i64: 1>, scalar_prefetch = 0 : i64, scratch_operands = 0 : i64, tpu.core_type = #tpu.core_type<tc>, window_params = [{transform_indices = @transform_0, window_bounds = array<i64: 8, 32>}, {pipeline_mode = #tpu.pipeline_mode<synchronous>, transform_indices = @transform_1, window_bounds = array<i64: 32, 128>}, {pipeline_mode = #tpu.pipeline_mode<synchronous>, transform_indices = @transform_2, window_bounds = array<i64: 1, 128>}, {transform_indices = @transform_3, window_bounds = array<i64: 8, 128>}]} {
    %c0 = arith.constant 0 : index
    %c0_0 = arith.constant 0 : index
    %0 = vector.load %arg1[%c0, %c0_0] : memref<8x32xbf16, #tpu.memory_space<vmem>>, vector<8x32xbf16>
    %c0_1 = arith.constant 0 : index
    %c0_2 = arith.constant 0 : index
    %1 = vector.load %arg2[%c0_1, %c0_2] : memref<32x128xbf16, #tpu.memory_space<vmem>>, vector<32x128xbf16>
    %cst = arith.constant dense<0.000000e+00> : vector<8x128xf32>
    %2 = tpu.matmul %0, %1, %cst {dimension_numbers = #tpu.dot_dimension_numbers<[1], [0], [0], [1], [0, 0, 1, 1], [], []>} : vector<8x32xbf16>, vector<32x128xbf16>, vector<8x128xf32> -> vector<8x128xf32>
    %c0_3 = arith.constant 0 : index
    %c0_4 = arith.constant 0 : index
    %3 = vector.load %arg3[%c0_3, %c0_4] : memref<1x128xf32, #tpu.memory_space<vmem>>, vector<1x128xf32>
    %4 = vector.broadcast %3 : vector<1x128xf32> to vector<8x128xf32>
    %5 = arith.addf %2, %4 : vector<8x128xf32>
    %c0_5 = arith.constant 0 : index
    %c0_6 = arith.constant 0 : index
    %6 = vector.load %arg4[%c0_5, %c0_6] : memref<8x128xf32, #tpu.memory_space<vmem>>, vector<8x128xf32>
    tpu.vector_store %arg4[%c0_5, %c0_6], %5 {strides = array<i32>} : memref<8x128xf32, #tpu.memory_space<vmem>>, vector<8x128xf32>,
    return
  }
  func.func @transform_0(%arg0: i32) -> (i32, i32) {
    %c0_i32 = arith.constant 0 : i32
    %c0_i32_0 = arith.constant 0 : i32
    return %arg0, %c0_i32 : i32, i32
  }
  func.func @transform_1(%arg0: i32) -> (i32, i32) {
    %c0_i32 = arith.constant 0 : i32
    %c0_i32_0 = arith.constant 0 : i32
    %c0_i32_1 = arith.constant 0 : i32
    return %c0_i32, %c0_i32_0 : i32, i32
  }
  func.func @transform_2(%arg0: i32) -> (i32, i32) {
    %c0_i32 = arith.constant 0 : i32
    %c0_i32_0 = arith.constant 0 : i32
    %c0_i32_1 = arith.constant 0 : i32
    return %c0_i32, %c0_i32_0 : i32, i32
  }
  func.func @transform_3(%arg0: i32) -> (i32, i32) {
    %c0_i32 = arith.constant 0 : i32
    %c0_i32_0 = arith.constant 0 : i32
    return %arg0, %c0_i32 : i32, i32
  }
}

</mosaic_0001>

<bundles_post_ra>
// kernel: modulation_forward.1
= control target key start
LH: loop header
LB: loop body
LE: loop exit
PB: predicated region body
PF: predicated region fallthrough
CT: control target
= control target key end

     0   :  { %8 = vsyncpa [#allocation3], 0  ;;  %s116_s15 = smov [#allocation2]   ;;  %s117_s17 = smov 64   ;;  %s151_s0 = inlined_call_operand.vmem [shape: bf16[8,32], index: 0, kind: input, shape index: {}]   ;;  %s152_s1 = inlined_call_operand.hbm [shape: bf16[32,128], index: 1, kind: input, shape index: {}]   ;;  %s153_s2 = inlined_call_operand.vmem [shape: f32[1,128], index: 2, kind: input, shape index: {}]   ;;  %s154_s3 = inlined_call_operand.vmem [shape: f32[8,128], index: 3, kind: output, shape index: {}]  }
   0x1   :  { %s15_s14 = sshll.u32 %s152_s1, 4  ;;  %s17_s16 = sshll.u32 %s116_s15, 4  ;;  %s16_s14 = int_to_ptr.hbm [resolvable:$true] %s15_s14  ;;  %s18_s16 = int_to_ptr.vmem [resolvable:$true] %s17_s16 }
   0x2   :  { %s118_s18 = smov 4  }
   0x3   :  { %23 = dma.hbm_to_vmem [thread:$0]  %s16_s14, 256, %s18_s16, [#allocation3], %s117_s17, %s117_s17, %s118_s18  }
   0x4   :  { %114 = dma.done.wait [#allocation3], 256  }
   0x5   :  { %115 = vsyncadd [#allocation3], 4294967040  ;;  %v85_v0 = vld [vmem:[#allocation2 + $0x8] sm:$0xff]  ;;  %v84_v1 = vld [vmem:[#allocation2] sm:$0xff]  ;;  %vm52_vm0 = vcmask 261120  }
   0x6   :  { %62 = vmatpush.bf16.msra.mxu0 %v85_v0  ;;  %v31_v2 = vld [vmem:[%s151_s0] sm:$0xf] }
   0x7   :  { %v89_v3 = vld [vmem:[%s153_s2] ss:$0 sm:$0xff] }
   0xa   :  { %63 = vmatpush.bf16.msra.mxu0 %v84_v1 }
   0xd   :  { %83 = vmatmul.msk.bf16.vlgmr.msra.gmra.mxu0 %vm52_vm0, %v31_v2 }
  0x8a   :  { %v65_v4 = vpop.f32.mrf.mxu0 }
  0x8b   :  { %v66_v5 = vadd.f32 %v89_v3, %v65_v4 }
  0x8d   :  { %69 = vst [vmem:[%s154_s3] sm:$0xff] %v66_v5 }
  0x92   :  { %v67_v6 = vpop.f32.mrf.mxu0 }
  0x93   :  { %74 = vsyncpa [#allocation3], 1 }

</bundles_post_ra>
